<compile_context>
chip_gen: v6e
topology: v6e:2x2x1
jax: 0.10.0
libtpu: 0.0.40
codegen_flags: <defaults>
</compile_context>

<pallas_src>
import jax
import jax.numpy as jnp
from jax.experimental import pallas as pl
from jax.experimental.pallas import tpu as pltpu


def linear_odef_kernel(w_ref, x_ref, o_ref):
    """w_ref: (4,) f32 in SMEM, row-major W = [[w00, w01], [w10, w11]].
    x_ref/o_ref: (tile_r, 128) blocks of the flat, feature-interleaved state:
    lane 2k holds x0 of one batch element, lane 2k+1 holds that element's x1."""
    x = x_ref[...].astype(jnp.float32)            # upcast once; VPU math in f32
    w00 = w_ref[0]
    w01 = w_ref[1]
    w10 = w_ref[2]
    w11 = w_ref[3]

    # Neighbour-within-pair values via XLU lane rotations (jnp.roll semantics):
    #   x_next[i] = x[(i + 1) % 128]   (only consumed on even lanes)
    #   x_prev[i] = x[(i - 1) % 128]   (only consumed on odd lanes)
    x_next = pltpu.roll(x, 127, axis=1)           # == roll by -1 on a 128-lane axis
    x_prev = pltpu.roll(x, 1, axis=1)

    lane = jax.lax.broadcasted_iota(jnp.int32, x.shape, dimension=1)
    is_feat0 = (lane & 1) == 0                    # even lane -> x0 position

    y_feat0 = w00 * x + w01 * x_next              # y0 = w00*x0 + w01*x1  (even lanes)
    y_feat1 = w10 * x_prev + w11 * x              # y1 = w10*x0 + w11*x1  (odd lanes)
    # Wrap-around lanes (0 and 127) only appear in the branch that the select
    # masks out, so the circular rotation is harmless.  Single full-tile store.
    o_ref[...] = jnp.where(is_feat0, y_feat0, y_feat1).astype(o_ref.dtype)


def _choose_tile_rows(n_rows, itemsize, *, max_tile_bytes=4 << 20, min_tiles=4):
    """Rows per block for an (n_rows, 128) array: multiple of the sublane
    quantum, <= ~max_tile_bytes per block, and >= min_tiles grid steps when
    there is enough work (keeps both v7x TensorCores busy)."""
    q = max(8, 32 // itemsize)                    # sublane quantum: f32->8, bf16->16, int8->32
    if n_rows <= q:
        return n_rows                             # single full-array block
    max_rows = max(q, (max_tile_bytes // (128 * itemsize)) // q * q)
    balanced = q * pl.cdiv(pl.cdiv(n_rows, min_tiles), q)
    return max(q, min(max_rows, balanced, (n_rows // q) * q))


def linear_odef(x, t, W, *, max_tile_bytes=4 << 20):
    """Pallas equivalent of LinearODEF.forward(x, t): returns x @ W.T.

    x: (B, 2); t is accepted and ignored (matches the PyTorch forward);
    W: (2, 2) in PyTorch nn.Linear layout (out_features, in_features)."""
    del t  # forward ignores t
    B, din = x.shape
    dout, din_w = W.shape
    assert (din, din_w, dout) == (2, 2, 2), "LinearODEF is hard-wired to 2 -> 2"

    # Flat, feature-interleaved, lane-dense view: pure reshape (bitcast), no relayout.
    n = B * din
    xf = x.reshape(n)
    n_pad = 128 * pl.cdiv(n, 128)
    if n_pad != n:
        # Only when B % 64 != 0 (one cheap pad).  No pad to tile multiples:
        # Pallas masks the ragged last grid block itself.
        xf = jnp.pad(xf, (0, n_pad - n))
    n_rows = n_pad // 128
    x2d = xf.reshape(n_rows, 128)

    itemsize = jnp.dtype(x.dtype).itemsize
    tile_r = _choose_tile_rows(n_rows, itemsize, max_tile_bytes=max_tile_bytes)
    n_tiles = pl.cdiv(n_rows, tile_r)

    # W as 4 scalars in SMEM (row-major: w00, w01, w10, w11).
    w_flat = W.astype(jnp.float32).reshape(-1)

    cost = pl.CostEstimate(
        flops=6 * B,                              # 4 mul + 2 add per batch element
        transcendentals=0,
        bytes_accessed=2 * n_pad * itemsize + 16,
    )

    y2d = pl.pallas_call(
        linear_odef_kernel,
        out_shape=jax.ShapeDtypeStruct((n_rows, 128), x.dtype),
        grid=(n_tiles,),
        in_specs=[
            pl.BlockSpec(memory_space=pltpu.MemorySpace.SMEM),  # W: 4 scalars, resident
            pl.BlockSpec((tile_r, 128), lambda i: (i, 0)),      # state tile, lane-dense
        ],
        out_specs=pl.BlockSpec((tile_r, 128), lambda i: (i, 0)),
        compiler_params=pltpu.CompilerParams(
            dimension_semantics=("parallel",),    # shard batch tiles across TCs (v7x)
            vmem_limit_bytes=32 * 1024 * 1024,    # > v5e's 16 MiB default scoped limit
        ),
        cost_estimate=cost,
    )(w_flat, x2d)

    # Back to (B, 2): reshape (bitcast) + drop the lane padding, if any.
    return y2d.reshape(n_pad)[:n].reshape(B, din)


if __name__ == "__main__":
    key = jax.random.PRNGKey(0)
    kx, kt = jax.random.split(key)

    # Small shapes consistent with the module: the Linear is hardcoded 2 -> 2.
    B = 8
    x = jax.random.normal(kx, (B, 2), dtype=jnp.float32)
    t = jax.random.normal(kt, (B, 1), dtype=jnp.float32)  # unused by forward

    # Classic spiral-dynamics matrix used with LinearODEF in the original notebook.
    W = jnp.array([[-0.1, -1.0],
                   [ 1.0, -0.1]], dtype=jnp.float32)

    y = linear_odef(x, t, W)
    y = jax.block_until_ready(y)

    # Sanity check against plain-JAX reference of x @ W.T.
    y_ref = x @ W.T
    assert y.shape == (B, 2)
    assert jnp.allclose(y, y_ref, atol=1e-5, rtol=1e-5)

    print("KERNEL_OK")
</pallas_src>

<mosaic_0001>
module attributes {stable_mosaic.version = 11 : i64} {
  func.func @linear_odef_kernel(%arg0: i32, %arg1: memref<4xf32, #tpu.memory_space<smem>>, %arg2: memref<1x128xf32, #tpu.memory_space<vmem>>, %arg3: memref<1x128xf32, #tpu.memory_space<vmem>>) attributes {dimension_semantics = [#tpu.dimension_semantics<parallel>], iteration_bounds = array<i64: 1>, scalar_prefetch = 0 : i64, scratch_operands = 0 : i64, tpu.core_type = #tpu.core_type<tc>, window_params = [{transform_indices = @transform_0, window_bounds = array<i64: 4>}, {transform_indices = @transform_1, window_bounds = array<i64: 1, 128>}, {transform_indices = @transform_2, window_bounds = array<i64: 1, 128>}]} {
    %c0 = arith.constant 0 : index
    %c0_0 = arith.constant 0 : index
    %0 = vector.load %arg2[%c0, %c0_0] : memref<1x128xf32, #tpu.memory_space<vmem>>, vector<1x128xf32>
    %c0_1 = arith.constant 0 : index
    %1 = memref.load %arg1[%c0_1] : memref<4xf32, #tpu.memory_space<smem>>
    %c1 = arith.constant 1 : index
    %2 = memref.load %arg1[%c1] : memref<4xf32, #tpu.memory_space<smem>>
    %c2 = arith.constant 2 : index
    %3 = memref.load %arg1[%c2] : memref<4xf32, #tpu.memory_space<smem>>
    %c3 = arith.constant 3 : index
    %4 = memref.load %arg1[%c3] : memref<4xf32, #tpu.memory_space<smem>>
    %c127_i32 = arith.constant 127 : i32
    %5 = tpu.dynamic_rotate %0 by %c127_i32 dim 1 : vector<1x128xf32>, i32 -> vector<1x128xf32>
    %c1_i32 = arith.constant 1 : i32
    %6 = tpu.dynamic_rotate %0 by %c1_i32 dim 1 : vector<1x128xf32>, i32 -> vector<1x128xf32>
    %7 = tpu.iota {dimensions = array<i32: 1>} : vector<1x128xi32>
    %c1_i32_2 = arith.constant 1 : i32
    %8 = vector.broadcast %c1_i32_2 : i32 to vector<1x128xi32>
    %9 = arith.andi %7, %8 : vector<1x128xi32>
    %c0_i32 = arith.constant 0 : i32
    %10 = vector.broadcast %c0_i32 : i32 to vector<1x128xi32>
    %11 = arith.cmpi eq, %9, %10 : vector<1x128xi32>
    %12 = vector.broadcast %1 : f32 to vector<1x128xf32>
    %13 = arith.mulf %12, %0 : vector<1x128xf32>
    %14 = vector.broadcast %2 : f32 to vector<1x128xf32>
    %15 = arith.mulf %14, %5 : vector<1x128xf32>
    %16 = arith.addf %13, %15 : vector<1x128xf32>
    %17 = vector.broadcast %3 : f32 to vector<1x128xf32>
    %18 = arith.mulf %17, %6 : vector<1x128xf32>
    %19 = vector.broadcast %4 : f32 to vector<1x128xf32>
    %20 = arith.mulf %19, %0 : vector<1x128xf32>
    %21 = arith.addf %18, %20 : vector<1x128xf32>
    %22 = arith.select %11, %16, %21 : vector<1x128xi1>, vector<1x128xf32>
    %c0_3 = arith.constant 0 : index
    %c0_4 = arith.constant 0 : index
    %23 = vector.load %arg3[%c0_3, %c0_4] : memref<1x128xf32, #tpu.memory_space<vmem>>, vector<1x128xf32>
    tpu.vector_store %arg3[%c0_3, %c0_4], %22 {strides = array<i32>} : memref<1x128xf32, #tpu.memory_space<vmem>>, vector<1x128xf32>,
    return
  }
  func.func @transform_0(%arg0: i32) -> i32 {
    %c0_i32 = arith.constant 0 : i32
    %c0_i32_0 = arith.constant 0 : i32
    return %c0_i32 : i32
  }
  func.func @transform_1(%arg0: i32) -> (i32, i32) {
    %c0_i32 = arith.constant 0 : i32
    %c0_i32_0 = arith.constant 0 : i32
    return %arg0, %c0_i32 : i32, i32
  }
  func.func @transform_2(%arg0: i32) -> (i32, i32) {
    %c0_i32 = arith.constant 0 : i32
    %c0_i32_0 = arith.constant 0 : i32
    return %arg0, %c0_i32 : i32, i32
  }
}

</mosaic_0001>

<bundles_post_ra>
// kernel: tpu_custom_call.1
= control target key start
LH: loop header
LB: loop body
LE: loop exit
PB: predicated region body
PF: predicated region fallthrough
CT: control target
= control target key end

     0   :  { %7 = vsyncpa [#allocation4], 0  ;;  %s130_s0 = inlined_call_operand.hbm [shape: f32[4], index: 0, kind: input, shape index: {}]   ;;  %s131_s1 = inlined_call_operand.vmem [shape: f32[1,128], index: 1, kind: input, shape index: {}]   ;;  %s132_s2 = inlined_call_operand.hbm [shape: f32[1,128], index: 2, kind: output, shape index: {}]  }
   0x1   :  { %8 = vsyncpa [#allocation3], 0  ;;  %s102_s9 = smov [#allocation2]  }
   0x2   :  { %16 = dma.hbm_to_smem %s130_s0, 16, %s102_s9, [#allocation4]  }
   0x3   :  { %98 = dma.done.wait [#allocation4], 16  }
   0x4   :  { %99 = vsyncadd [#allocation4], 4294967280 }
   0x5   :  { %22 = sfence }
   0x6   :  { %v23_v0 = vld [vmem:[%s131_s1] sm:$0x1]  ;;  %s103_s14 = smov 127   ;;  %s104_s15 = smov 1   ;;  %v32_v1 = vlaneseq }
   0x7   :  { %28 = vrot.lane.b32.xlu0 %v23_v0, %s103_s14  ;;  %s24_s16 = sld [smem:[#allocation2]]  ;;  %s105_s0 = smov [#allocation5]  }
   0x8   :  { %s63_s17 = sld [smem:[#allocation2 + $0x1]]  ;;  %v33_v2 = vand.u32 127, %v32_v1  ;;  %s54_s1 = sshll.u32 %s105_s0, 4  ;;  %s55_s1 = int_to_ptr.vmem [resolvable:$true] %s54_s1 }
   0x9   :  { %s65_s18 = sld [smem:[#allocation2 + $0x3]]  ;;  %s78_s20 = scalar_lea.vmem %s55_s1, 16 }
   0xa   :  { %s64_s19 = sld [smem:[#allocation2 + $0x2]]  ;;  %v34_v8 = vand.u32 1, %v33_v2  ;;  %p79_p0 = scmp.ne.s32.totalorder %s55_s1, %s78_s20 }
   0xb   :  { %30 = vrot.lane.b32.xlu0 %v23_v0, %s104_s15  ;;  %s82_s21 = scalar_lea.vmem %s55_s1, 32  ;;  %p83_p1 = scmp.lt.s32.totalorder %s55_s1, %s55_s1 }
   0xc   :  { %vm35_vm0 = vcmp.eq.s32.totalorder %v34_v8, 0  ;;  %p84_p2 = scmp.lt.s32.totalorder %s82_s21, %s78_s20 }
   0xd   :  { %v36_v3 = vstv %s24_s16 }
   0xe   :  { %v38_v4 = vstv %s63_s17  ;;  %v37_v9 = vmul.f32 %v36_v3, %v23_v0  ;;  %p85_p3 = por %p84_p2, %p83_p1 }
   0xf   :  { %v43_v6 = vstv %s65_s18 }
  0x10   :  { %v41_v7 = vstv %s64_s19  ;;  %v44_v11 = vmul.f32 %v43_v6, %v23_v0  ;;  %p86_p4 = pnand %p85_p3, %p79_p0 }
  0x79   :  { %v29_v5 = vpop.permute.xlu0 %28 }
  0x7a   :  { %v39_v10 = vmul.f32 %v38_v4, %v29_v5 }
  0x7c   :  { %v40_v14 = vadd.f32 %v39_v10, %v37_v9 }
  0x7d   :  { %v31_v12 = vpop.permute.xlu0 %30 }
  0x7e   :  { %v42_v13 = vmul.f32 %v41_v7, %v31_v12 }
  0x80   :  { %v45_v15 = vadd.f32 %v44_v11, %v42_v13 }
  0x82   :  { %v46_v16 = vsel %vm35_vm0, %v40_v14, %v45_v15 }
  0x83   :  { %47 = vst [vmem:[#allocation5] sm:$0x1] %v46_v16 }
  0x84   :  { %89 = shalt.err (!%p86_p4)
}
  0x85   :  { %57 = dma.vmem_to_hbm [thread:$0]  %s55_s1, 16, %s132_s2, [#allocation3]  }
  0x86   :  { %100 = dma.done.wait [#allocation3], 16  }
  0x87   :  { %101 = vsyncadd [#allocation3], 4294967280 }
  0x88   :  { %61 = vsyncpa [#allocation3], 1 }
  0x89   :  { %62 = vsyncpa [#allocation4], 1 }

</bundles_post_ra>
